<compile_context>
chip_gen: v7x
topology: tpu7x:2x2x1
jax: 0.10.0
libtpu: 0.0.40
codegen_flags: <defaults>
</compile_context>

<pallas_src>
import functools
import math

import jax
import jax.numpy as jnp
from jax.experimental import pallas as pl
from jax.experimental.pallas import tpu as pltpu


def _hash_u32(x):
    """'lowbias32' integer hash: fixed shifts + uint32 mults (VPU friendly)."""
    x = x ^ (x >> 16)
    x = x * jnp.uint32(0x7FEB352D)
    x = x ^ (x >> 15)
    x = x * jnp.uint32(0x846CA68B)
    x = x ^ (x >> 16)
    return x


def _gaussian_noise_kernel(seed_ref, x_ref, o_ref, *, sigma, pair):
    block_rows, cols = x_ref.shape

    tile = pl.program_id(0).astype(jnp.uint32)
    seed = seed_ref[0].astype(jnp.uint32) * jnp.uint32(0x9E3779B9)

    # One Box-Muller pair per generated (row, col) position.
    gcols = cols // 2 if pair else cols
    shape = (block_rows, gcols)
    r_i = jax.lax.broadcasted_iota(jnp.int32, shape, 0).astype(jnp.uint32)
    c_i = jax.lax.broadcasted_iota(jnp.int32, shape, 1).astype(jnp.uint32)

    # Two counter slots per pair; disjoint across elements for a fixed seed.
    # (Counters wrap mod 2^32 for > 2^31 pairs -- fine for noise injection.)
    row_g = tile * jnp.uint32(block_rows) + r_i
    idx = (row_g * jnp.uint32(gcols) + c_i) * jnp.uint32(2) + seed

    b1 = _hash_u32(idx)
    b2 = _hash_u32(idx + jnp.uint32(1))

    # Mantissa stuffing: v in [1,2) without an int->float convert.
    one_bits = jnp.uint32(0x3F800000)
    v1 = jax.lax.bitcast_convert_type((b1 >> 9) | one_bits, jnp.float32)
    v2 = jax.lax.bitcast_convert_type((b2 >> 9) | one_bits, jnp.float32)
    u1 = jnp.float32(2.0) - v1          # (0, 1]  -> log() is safe
    u2 = v2 - jnp.float32(1.0)          # [0, 1)

    r = jnp.sqrt(jnp.float32(-2.0) * jnp.log(u1))
    theta = jnp.float32(2.0 * math.pi) * u2
    z0 = r * jnp.cos(theta)
    if pair:
        z1 = r * jnp.sin(theta)
        # cols//2 is a multiple of 128 on this path -> lane-aligned concat,
        # single full-width (unmasked) store.
        noise = jnp.concatenate([z0, z1], axis=1)
    else:
        noise = z0

    out = x_ref[...].astype(jnp.float32) + jnp.float32(sigma) * noise
    o_ref[...] = out.astype(o_ref.dtype)


def gaussian_noise(x, seed, sigma=0.1, training=True, *,
                   target_block_bytes=2 * 1024 * 1024):
    """Pallas implementation of GaussianNoise.forward (NCHW or generic)."""
    if sigma == 0 or not training:
        return x

    orig_shape = x.shape
    if x.ndim >= 2:
        rows = math.prod(orig_shape[:-2]) if x.ndim > 2 else 1
        cols = orig_shape[-2] * orig_shape[-1]
    else:
        rows, cols = 1, int(x.size)
    if rows == 0 or cols == 0:
        return x

    x2 = x.reshape(rows, cols)
    itemsize = jnp.dtype(x.dtype).itemsize
    # Sublane multiple by dtype width (8 for 32-bit, 16 for 16-bit, 32 for 8-bit).
    sub = {4: 8, 2: 16, 1: 32}.get(itemsize, 8)

    # Lane-dense blocks (full cols); tile only the sublane axis to ~2 MiB per
    # block so (in + out) * 2 double-buffers stay well under the scoped VMEM
    # limit on every chip (incl. v7x's 64 MiB physical / 32 MiB default).
    bytes_per_row = max(1, cols * itemsize)
    tm = max(1, target_block_bytes // bytes_per_row)
    tm = max(sub, (tm // sub) * sub)
    tm = min(tm, rows)                  # either a multiple of `sub` or == rows
    grid = pl.cdiv(rows, tm)

    pair = (cols % 256 == 0)            # both Box-Muller outputs, lane halves

    seed_arr = jnp.asarray([seed], dtype=jnp.int32)
    kernel = functools.partial(_gaussian_noise_kernel,
                               sigma=float(sigma), pair=pair)

    n_elem = rows * cols
    cost = pl.CostEstimate(
        flops=14 * n_elem,
        transcendentals=(2 if pair else 3) * n_elem,
        bytes_accessed=2 * n_elem * itemsize,
    )

    out2 = pl.pallas_call(
        kernel,
        out_shape=jax.ShapeDtypeStruct((rows, cols), x.dtype),
        grid_spec=pltpu.PrefetchScalarGridSpec(
            num_scalar_prefetch=1,
            grid=(grid,),
            in_specs=[pl.BlockSpec((tm, cols), lambda i, seed_ref: (i, 0))],
            out_specs=pl.BlockSpec((tm, cols), lambda i, seed_ref: (i, 0)),
        ),
        compiler_params=pltpu.CompilerParams(
            dimension_semantics=("parallel",)),
        input_output_aliases={1: 0},    # operand 0 is the prefetched seed
        cost_estimate=cost,
    )(seed_arr, x2)

    return out2.reshape(orig_shape)

# TODO(synk): the ((noise+x).detach()-x).detach()+x straight-through autograd
# trick has no forward-pass effect and is not represented here (forward only).


if __name__ == "__main__":
    key = jax.random.PRNGKey(0)
    x = jax.random.normal(key, (2, 4, 16, 16), dtype=jnp.float32)

    sigma = 0.1
    out = gaussian_noise(x, seed=1234, sigma=sigma, training=True)
    out = jax.block_until_ready(out)

    assert out.shape == x.shape and out.dtype == x.dtype

    # Sanity: added noise should be roughly zero-mean with std ~= sigma.
    diff = out - x
    mean = float(jnp.mean(diff))
    std = float(jnp.std(diff))
    assert abs(mean) < 0.05, mean
    assert 0.5 * sigma < std < 2.0 * sigma, std

    # Deterministic in the seed.
    out_again = gaussian_noise(x, seed=1234, sigma=sigma, training=True)
    out_again = jax.block_until_ready(out_again)
    assert bool(jnp.all(out == out_again))

    # Eval mode / sigma == 0 are identity.
    out_eval = gaussian_noise(x, seed=1234, sigma=sigma, training=False)
    assert bool(jnp.all(out_eval == x))
    out_zero = gaussian_noise(x, seed=1234, sigma=0.0, training=True)
    assert bool(jnp.all(out_zero == x))

    print("KERNEL_OK")
</pallas_src>

<mosaic_0001>
module attributes {stable_mosaic.version = 11 : i64} {
  func.func @_gaussian_noise_kernel(%arg0: i32, %arg1: memref<1xi32, #tpu.memory_space<smem>>, %arg2: memref<8x256xf32, #tpu.memory_space<vmem>>, %arg3: memref<8x256xf32, #tpu.memory_space<vmem>>) attributes {dimension_semantics = [#tpu.dimension_semantics<parallel>], iteration_bounds = array<i64: 1>, scalar_prefetch = 1 : i64, scratch_operands = 0 : i64, tpu.core_type = #tpu.core_type<tc>, window_params = [{transform_indices = @transform_0, window_bounds = array<i64: 8, 256>}, {transform_indices = @transform_1, window_bounds = array<i64: 8, 256>}]} {
    %c0 = arith.constant 0 : index
    %0 = memref.load %arg1[%c0] : memref<1xi32, #tpu.memory_space<smem>>
    %c-1640531527_i32 = arith.constant -1640531527 : i32
    %1 = arith.muli %0, %c-1640531527_i32 : i32
    %2 = tpu.iota {dimensions = array<i32: 0>} : vector<8x128xi32>
    %3 = tpu.iota {dimensions = array<i32: 1>} : vector<8x128xi32>
    %c8_i32 = arith.constant 8 : i32
    %4 = arith.muli %arg0, %c8_i32 : i32
    %5 = vector.broadcast %4 : i32 to vector<8x128xi32>
    %6 = arith.addi %5, %2 : vector<8x128xi32>
    %c128_i32 = arith.constant 128 : i32
    %7 = vector.broadcast %c128_i32 : i32 to vector<8x128xi32>
    %8 = arith.muli %6, %7 : vector<8x128xi32>
    %9 = arith.addi %8, %3 : vector<8x128xi32>
    %c2_i32 = arith.constant 2 : i32
    %10 = vector.broadcast %c2_i32 : i32 to vector<8x128xi32>
    %11 = arith.muli %9, %10 : vector<8x128xi32>
    %12 = vector.broadcast %1 : i32 to vector<8x128xi32>
    %13 = arith.addi %11, %12 : vector<8x128xi32>
    %c16_i32 = arith.constant 16 : i32
    %14 = vector.broadcast %c16_i32 : i32 to vector<8x128xi32>
    %15 = arith.shrui %13, %14 : vector<8x128xi32>
    %16 = arith.xori %13, %15 : vector<8x128xi32>
    %c2146121005_i32 = arith.constant 2146121005 : i32
    %17 = vector.broadcast %c2146121005_i32 : i32 to vector<8x128xi32>
    %18 = arith.muli %16, %17 : vector<8x128xi32>
    %c15_i32 = arith.constant 15 : i32
    %19 = vector.broadcast %c15_i32 : i32 to vector<8x128xi32>
    %20 = arith.shrui %18, %19 : vector<8x128xi32>
    %21 = arith.xori %18, %20 : vector<8x128xi32>
    %c-2073254261_i32 = arith.constant -2073254261 : i32
    %22 = vector.broadcast %c-2073254261_i32 : i32 to vector<8x128xi32>
    %23 = arith.muli %21, %22 : vector<8x128xi32>
    %c16_i32_0 = arith.constant 16 : i32
    %24 = vector.broadcast %c16_i32_0 : i32 to vector<8x128xi32>
    %25 = arith.shrui %23, %24 : vector<8x128xi32>
    %26 = arith.xori %23, %25 : vector<8x128xi32>
    %c1_i32 = arith.constant 1 : i32
    %27 = vector.broadcast %c1_i32 : i32 to vector<8x128xi32>
    %28 = arith.addi %13, %27 : vector<8x128xi32>
    %c16_i32_1 = arith.constant 16 : i32
    %29 = vector.broadcast %c16_i32_1 : i32 to vector<8x128xi32>
    %30 = arith.shrui %28, %29 : vector<8x128xi32>
    %31 = arith.xori %28, %30 : vector<8x128xi32>
    %c2146121005_i32_2 = arith.constant 2146121005 : i32
    %32 = vector.broadcast %c2146121005_i32_2 : i32 to vector<8x128xi32>
    %33 = arith.muli %31, %32 : vector<8x128xi32>
    %c15_i32_3 = arith.constant 15 : i32
    %34 = vector.broadcast %c15_i32_3 : i32 to vector<8x128xi32>
    %35 = arith.shrui %33, %34 : vector<8x128xi32>
    %36 = arith.xori %33, %35 : vector<8x128xi32>
    %c-2073254261_i32_4 = arith.constant -2073254261 : i32
    %37 = vector.broadcast %c-2073254261_i32_4 : i32 to vector<8x128xi32>
    %38 = arith.muli %36, %37 : vector<8x128xi32>
    %c16_i32_5 = arith.constant 16 : i32
    %39 = vector.broadcast %c16_i32_5 : i32 to vector<8x128xi32>
    %40 = arith.shrui %38, %39 : vector<8x128xi32>
    %41 = arith.xori %38, %40 : vector<8x128xi32>
    %c9_i32 = arith.constant 9 : i32
    %42 = vector.broadcast %c9_i32 : i32 to vector<8x128xi32>
    %43 = arith.shrui %26, %42 : vector<8x128xi32>
    %c1065353216_i32 = arith.constant 1065353216 : i32
    %44 = vector.broadcast %c1065353216_i32 : i32 to vector<8x128xi32>
    %45 = arith.ori %43, %44 : vector<8x128xi32>
    %46 = tpu.bitcast %45 : vector<8x128xi32> -> vector<8x128xf32>
    %c9_i32_6 = arith.constant 9 : i32
    %47 = vector.broadcast %c9_i32_6 : i32 to vector<8x128xi32>
    %48 = arith.shrui %41, %47 : vector<8x128xi32>
    %c1065353216_i32_7 = arith.constant 1065353216 : i32
    %49 = vector.broadcast %c1065353216_i32_7 : i32 to vector<8x128xi32>
    %50 = arith.ori %48, %49 : vector<8x128xi32>
    %51 = tpu.bitcast %50 : vector<8x128xi32> -> vector<8x128xf32>
    %cst = arith.constant 2.000000e+00 : f32
    %52 = vector.broadcast %cst : f32 to vector<8x128xf32>
    %53 = arith.subf %52, %46 : vector<8x128xf32>
    %cst_8 = arith.constant 1.000000e+00 : f32
    %54 = vector.broadcast %cst_8 : f32 to vector<8x128xf32>
    %55 = arith.subf %51, %54 : vector<8x128xf32>
    %56 = math.log %53 : vector<8x128xf32>
    %cst_9 = arith.constant -2.000000e+00 : f32
    %57 = vector.broadcast %cst_9 : f32 to vector<8x128xf32>
    %58 = arith.mulf %57, %56 : vector<8x128xf32>
    %59 = math.sqrt %58 : vector<8x128xf32>
    %cst_10 = arith.constant 6.28318548 : f32
    %60 = vector.broadcast %cst_10 : f32 to vector<8x128xf32>
    %61 = arith.mulf %60, %55 : vector<8x128xf32>
    %62 = math.cos %61 : vector<8x128xf32>
    %63 = arith.mulf %59, %62 : vector<8x128xf32>
    %64 = math.sin %61 : vector<8x128xf32>
    %65 = arith.mulf %59, %64 : vector<8x128xf32>
    %66 = tpu.concatenate %63, %65 in 1 : vector<8x128xf32>, vector<8x128xf32> -> vector<8x256xf32>
    %c0_11 = arith.constant 0 : index
    %c0_12 = arith.constant 0 : index
    %67 = vector.load %arg2[%c0_11, %c0_12] : memref<8x256xf32, #tpu.memory_space<vmem>>, vector<8x256xf32>
    %cst_13 = arith.constant 1.000000e-01 : f32
    %68 = vector.broadcast %cst_13 : f32 to vector<8x256xf32>
    %69 = arith.mulf %68, %66 : vector<8x256xf32>
    %70 = arith.addf %67, %69 : vector<8x256xf32>
    %c0_14 = arith.constant 0 : index
    %c0_15 = arith.constant 0 : index
    %71 = vector.load %arg3[%c0_14, %c0_15] : memref<8x256xf32, #tpu.memory_space<vmem>>, vector<8x256xf32>
    tpu.vector_store %arg3[%c0_14, %c0_15], %70 {strides = array<i32>} : memref<8x256xf32, #tpu.memory_space<vmem>>, vector<8x256xf32>,
    return
  }
  func.func @transform_0(%arg0: i32, %arg1: memref<1xi32, #tpu.memory_space<smem>>) -> (i32, i32) {
    %c0_i32 = arith.constant 0 : i32
    %c0_i32_0 = arith.constant 0 : i32
    return %arg0, %c0_i32 : i32, i32
  }
  func.func @transform_1(%arg0: i32, %arg1: memref<1xi32, #tpu.memory_space<smem>>) -> (i32, i32) {
    %c0_i32 = arith.constant 0 : i32
    %c0_i32_0 = arith.constant 0 : i32
    return %arg0, %c0_i32 : i32, i32
  }
}

</mosaic_0001>

<bundles_post_ra>
// kernel: tpu_custom_call.1
= control target key start
LH: loop header
LB: loop body
LE: loop exit
PB: predicated region body
PF: predicated region fallthrough
CT: control target
= control target key end

     0   :  { %8 = vsyncpa [#allocation5], 0  ;;  %s456_s0 = inlined_call_operand.<no memory space> [shape: s32[1], index: 0, kind: input, shape index: {}]   ;;  %s457_s1 = inlined_call_operand.hbm [shape: f32[8,256], index: 1, kind: input, shape index: {}, may-alias: {1,2}]   ;;  %s458_s2 = inlined_call_operand.hbm [shape: f32[8,256], index: 2, kind: output, shape index: {}, may-alias: {1,2}]  }
   0x1   :  { %9 = vsyncpa [#allocation6], 0  ;;  %s382_s9 = smov [#allocation4]   ;;  %s334_s13 = scalar_lea.hbm %s457_s1, 256 }
   0x2   :  { %s16_s10 = sshll.u32 %s382_s9, 4  ;;  %p335_p0 = scmp.ne.s32.totalorder %s457_s1, %s334_s13  ;;  %s17_s10 = int_to_ptr.vmem [resolvable:$true] %s16_s10 }
   0x3   :  { %p338_p1 = scmp.lt.u32.totalorder %s334_s13, %s457_s1 }
   0x5   :  { %p340_p2 = pnand %p338_p1, %p335_p0 }
   0x7   :  { %343 = shalt.err (!%p340_p2)
}
   0x8   :  { %s344_s18 = scalar_lea.vmem %s17_s10, 256  ;;  %p349_p4 = scmp.lt.s32.totalorder %s17_s10, %s17_s10 }
   0x9   :  { %p345_p3 = scmp.ne.s32.totalorder %s17_s10, %s344_s18  ;;  %p350_p5 = scmp.lt.s32.totalorder %s344_s18, %s344_s18 }
   0xb   :  { %p351_p6 = por %p350_p5, %p349_p4 }
   0xd   :  { %p352_p7 = pnand %p351_p6, %p345_p3 }
   0xf   :  { %355 = shalt.err (!%p352_p7)
}
  0x10   :  { %19 = dma.hbm_to_vmem [thread:$0]  %s457_s1, 256, %s17_s10, [#allocation5]  }
  0x11   :  { %378 = dma.done.wait [#allocation5], 256  }
  0x12   :  { %379 = vsyncadd [#allocation5], 4294967040  ;;  %v25_v0 = vlaneseq  ;;  %s24_s23 = smul.u32 2654435769, %s456_s0  ;;  %v383_v36 = vmov 683565275  }
  0x13   :  { %v384_v38 = vmov 2475754826   ;;  %v385_v40 = vmov 2131351028   ;;  %v386_v43 = vmov 2102212464  }
  0x14   :  { %v26_v1 = vshrl.u32 %v25_v0, 7  ;;  %v28_v2 = vand.u32 127, %v25_v0  ;;  %v35_v5 = vstv %s24_s23  ;;  %v387_v45 = vmov 920167782   ;;  %s389_s0 = smov [#allocation7]  }
  0x15   :  { %v388_v53 = vmov 1326507024   ;;  %s296_s1 = sshll.u32 %s389_s0, 4  ;;  %s297_s1 = int_to_ptr.vmem [resolvable:$true] %s296_s1 }
  0x16   :  { %v32_v3 = vmul.u32 128, %v26_v1  ;;  %s356_s24 = scalar_lea.vmem %s297_s1, 256  ;;  %p361_p9 = scmp.lt.s32.totalorder %s297_s1, %s297_s1 }
  0x17   :  { %p357_p8 = scmp.ne.s32.totalorder %s297_s1, %s356_s24  ;;  %p362_p10 = scmp.lt.s32.totalorder %s356_s24, %s356_s24 }
  0x18   :  { %v33_v4 = vadd.s32 %v32_v3, %v28_v2 }
  0x19   :  { %p363_p11 = por %p362_p10, %p361_p9 }
  0x1a   :  { %v34_v6 = vmul.u32 2, %v33_v4 }
  0x1b   :  { %p364_p12 = pnand %p363_p11, %p357_p8 }
  0x1c   :  { %v36_v7 = vadd.s32 %v35_v5, %v34_v6 }
  0x1e   :  { %v45_v8 = vadd.s32 1, %v36_v7  ;;  %v37_v18 = vshrl.u32 %v36_v7, 16 }
  0x20   :  { %v46_v9 = vshrl.u32 %v45_v8, 16  ;;  %v38_v21 = vxor.u32 %v37_v18, %v36_v7 }
  0x22   :  { %v47_v10 = vxor.u32 %v46_v9, %v45_v8  ;;  %v39_v24 = vmul.u32 2146121005, %v38_v21 }
  0x24   :  { %v48_v11 = vmul.u32 2146121005, %v47_v10  ;;  %v40_v28 = vshrl.u32 %v39_v24, 15 }
  0x26   :  { %v49_v12 = vshrl.u32 %v48_v11, 15  ;;  %v41_v32 = vxor.u32 %v40_v28, %v39_v24 }
  0x28   :  { %v50_v13 = vxor.u32 %v49_v12, %v48_v11  ;;  %v42_v47 = vmul.u32 2221713035, %v41_v32 }
  0x2a   :  { %v51_v14 = vmul.u32 2221713035, %v50_v13  ;;  %v43_v0 = vshrl.u32 %v42_v47, 16 }
  0x2c   :  { %v52_v15 = vshrl.u32 %v51_v14, 16  ;;  %v44_v11 = vxor.u32 %v43_v0, %v42_v47 }
  0x2e   :  { %v53_v16 = vxor.u32 %v52_v15, %v51_v14 }
  0x30   :  { %v57_v17 = vshrl.u32 %v53_v16, 9  ;;  %v54_v16 = vshrl.u32 %v44_v11, 9  ;;  %v282_v11 = vld [vmem:[#allocation4] sm:$0xff] }
  0x32   :  { %v58_v19 = vor.u32 1065353216, %v57_v17 }
  0x34   :  { %v305_v20 = vadd.f32 -1.0, %v58_v19 }
  0x36   :  { %v420_v22 = vmul.f32 6.2831855, %v305_v20  ;;  %v55_v20 = vor.u32 1065353216, %v54_v16 }
  0x38   :  { %v76_v23 = vand.u32 2139095040, %v420_v22  ;;  %v73_v27 = vand.u32 2147483647, %v420_v22  ;;  %v60_v24 = vsub.f32 2.0, %v55_v20  ;;  %vm75_vm7 = vcmp.lt.s32.totalorder %v420_v22, 0 }
  0x3a   :  { %v77_v25 = vshrl.u32 %v76_v23, 23  ;;  %v80_v30 = vand.u32 8388607, %v73_v27  ;;  %326 = vlog2.f32 %v60_v24  ;;  %vm74_vm8 = vcmp.le.f32.partialorder %v73_v27, 0.7853982 }
  0x3c   :  { %v306_v26 = vadd.s32 4294967169, %v77_v25  ;;  %v81_v42 = vor.u32 8388608, %v80_v30 }
  0x3e   :  { %v83_v29 = vadd.s32 1, %v306_v26  ;;  %v121_v60 = vshll.u32 %v81_v42, 8 }
  0x40   :  { %vm84_vm0 = vcmp.gt.s32.totalorder %v83_v29, 0 }
  0x41   :  { %v85_v31 = vsel %vm84_vm0, %v83_v29, 0 }
  0x42   :  { %v87_v33 = vand.u32 31, %v85_v31  ;;  %v86_v34 = vshrl.u32 %v85_v31, 5 }
  0x44   :  { %v88_v35 = vsub.s32 32, %v87_v33  ;;  %v90_v37 = vshll.u32 %v383_v36, %v87_v33  ;;  %v93_v39 = vshll.u32 %v384_v38, %v87_v33  ;;  %v96_v41 = vshll.u32 %v385_v40, %v87_v33 }
  0x45   :  { %v99_v44 = vshll.u32 %v386_v43, %v87_v33  ;;  %v102_v46 = vshll.u32 %v387_v45, %v87_v33  ;;  %vm105_vm1 = vcmp.lt.s32.totalorder %v86_v34, 1  ;;  %vm108_vm2 = vcmp.lt.s32.totalorder %v86_v34, 4  ;;  %v327_v33 = vpop.eup %326 }
  0x46   :  { %v91_v48 = vshrl.u32 %v384_v38, %v88_v35  ;;  %v94_v49 = vshrl.u32 %v385_v40, %v88_v35  ;;  %v97_v50 = vshrl.u32 %v386_v43, %v88_v35  ;;  %v89_v51 = vshrl.u32 %v383_v36, %v88_v35 }
  0x47   :  { %v100_v52 = vshrl.u32 %v387_v45, %v88_v35  ;;  %v103_v54 = vshrl.u32 %v388_v53, %v88_v35  ;;  %vm107_vm3 = vcmp.lt.s32.totalorder %v86_v34, 3  ;;  %vm106_vm4 = vcmp.lt.s32.totalorder %v86_v34, 2 }
  0x48   :  { %v92_v55 = vor.u32 %v91_v48, %v90_v37  ;;  %v95_v56 = vor.u32 %v94_v49, %v93_v39  ;;  %v98_v57 = vor.u32 %v97_v50, %v96_v41  ;;  %v63_v38 = vmul.f32 0.6931472, %v327_v33 }
  0x49   :  { %v101_v58 = vor.u32 %v100_v52, %v99_v44  ;;  %v104_v59 = vor.u32 %v103_v54, %v102_v46 }
  0x4a   :  { %v110_v61 = vsel %vm108_vm2, %v98_v57, 2102212464  ;;  %v113_v62 = vsel %vm105_vm1, %v92_v55, %v95_v56  ;;  %v117_v63 = vsel %vm105_vm1, %v95_v56, %v98_v57  ;;  %v109_v3 = vsel %vm105_vm1, %v89_v51, %v92_v55 }
  0x4b   :  { %v114_v1 = vsel %vm108_vm2, %v101_v58, 920167782  ;;  %v118_v2 = vsel %vm108_vm2, %v104_v59, 1326507024  ;;  %v111_v4 = vsel %vm107_vm3, %v95_v56, %v110_v61  ;;  %v64_v43 = vmul.f32 -2.0, %v63_v38 }
  0x4c   :  { %v115_v5 = vsel %vm107_vm3, %v98_v57, %v114_v1  ;;  %v119_v6 = vsel %vm107_vm3, %v101_v58, %v118_v2  ;;  %v112_v12 = vsel %vm106_vm4, %v109_v3, %v111_v4  ;;  %vm165_vm1 = vweird.f32 %v420_v22 }
  0x4d   :  { %v116_v7 = vsel %vm106_vm4, %v113_v62, %v115_v5  ;;  %v120_v8 = vsel %vm106_vm4, %v117_v63, %v119_v6  ;;  %v128_v15 = vmul.u32 %v121_v60, %v112_v12  ;;  %328 = vrsqrt.f32 %v64_v43  ;;  %v283_v12 = vld [vmem:[#allocation4 + $0x8] sm:$0xff] }
  0x4e   :  { %v429_v9 = vmul.u32.u64.low %v121_v60, %v120_v8  ;;  %v430_v10 = vmul.u32.u64.high %v121_v60, %v120_v8, %v429_v9  ;;  %v432_v13 = vmul.u32.u64.low %v121_v60, %v116_v7  ;;  %v433_v14 = vmul.u32.u64.high %v121_v60, %v116_v7, %v432_v13 }
  0x4f   :  { %vm67_vm9 = vcmp.eq.f32.partialorder %v64_v43, inf  ;;  %vm69_vm10 = vcmp.eq.f32.partialorder %v64_v43, 0.0  ;;  %v70_v60 = vand.u32 2147483648, %v64_v43 }
  0x50   :  { %vm130_vm5 = vc.u32 %v430_v10, %v432_v13  ;;  %v131_v17 = vadd.s32 1, %v433_v14  ;;  %v129_v32 = vadd.s32 %v432_v13, %v430_v10 }
  0x52   :  { %v132_v18 = vsel %vm130_vm5, %v131_v17, %v433_v14 }
  0x53   :  { %v133_v19 = vadd.s32 %v132_v18, %v128_v15 }
  0x55   :  { %v134_v21 = vadd.s32 536870912, %v133_v19 }
  0x57   :  { %v135_v23 = vshrl.u32 %v134_v21, 30  ;;  %v329_v55 = vpop.eup %328 }
  0x58   :  { %v66_v58 = vmul.f32 %v329_v55, %v64_v43 }
  0x59   :  { %v136_v25 = vshll.u32 %v135_v23, 30  ;;  %v159_v47 = vsub.s32 4, %v135_v23 }
  0x5a   :  { %v68_v61 = vsel %vm67_vm9, %v64_v43, %v66_v58 }
  0x5b   :  { %v137_v26 = vsub.s32 %v133_v19, %v136_v25  ;;  %v160_v50 = vsel %vm75_vm7, %v159_v47, %v135_v23  ;;  %v71_v2 = vsel %vm69_vm10, %v70_v60, %v68_v61 }
  0x5c   :  { %v162_v53 = vsel %vm74_vm8, 0, %v160_v50 }
  0x5d   :  { %v139_v28 = vsub.s32 0, %v137_v26  ;;  %v270_v54 = vadd.s32 3, %v162_v53  ;;  %v166_v56 = vand.u32 3, %v162_v53 }
  0x5f   :  { %v307_v29 = vmin.u32 %v139_v28, %v137_v26  ;;  %v271_v57 = vand.u32 3, %v270_v54  ;;  %vm171_vm11 = vcmp.eq.s32.totalorder %v166_v56, 2  ;;  %vm168_vm13 = vcmp.eq.s32.totalorder %v166_v56, 0 }
  0x60   :  { %vm167_vm15 = vcmp.lt.s32.totalorder %v166_v56, 2 }
  0x61   :  { %v141_v30 = vclz %v307_v29  ;;  %vm276_vm12 = vcmp.eq.s32.totalorder %v271_v57, 2  ;;  %vm273_vm14 = vcmp.eq.s32.totalorder %v271_v57, 0  ;;  %vm272_vm0 = vcmp.lt.s32.totalorder %v271_v57, 2 }
  0x63   :  { %v308_v31 = vadd.s32 4294967294, %v141_v30 }
  0x65   :  { %vm309_vm6 = vcmp.lt.s32.totalorder %v308_v31, 0 }
  0x66   :  { %v144_v34 = vsel %vm309_vm6, 0, %v308_v31 }
  0x67   :  { %v145_v35 = vsub.s32 32, %v144_v34  ;;  %v146_v36 = vshll.u32 %v137_v26, %v144_v34  ;;  %v149_v37 = vsub.s32 4294967266, %v144_v34 }
  0x69   :  { %v147_v39 = vshrl.u32 %v129_v32, %v145_v35  ;;  %v150_v40 = vadd.s32 127, %v149_v37 }
  0x6b   :  { %v148_v41 = vor.u32 %v147_v39, %v146_v36  ;;  %v151_v42 = vshll.u32 %v150_v40, 23 }
  0x6d   :  { %v152_v44 = vor.u32 4788187, %v151_v42  ;;  %v155_v45 = vcvt.s32.f32 %v148_v41 }
  0x6f   :  { %v153_v46 = vand.u32 2147483647, %v152_v44 }
  0x71   :  { %v156_v48 = vmul.f32 %v155_v45, %v153_v46 }
  0x73   :  { %v157_v49 = vxor.u32 2147483648, %v156_v48 }
  0x75   :  { %v158_v51 = vsel %vm75_vm7, %v157_v49, %v156_v48 }
  0x76   :  { %v161_v52 = vsel %vm74_vm8, %v420_v22, %v158_v51 }
  0x77   :  { %330 = vcosq.f32 %v161_v52 }
  0x78   :  { %332 = vsinq.f32 %v161_v52 }
  0x81   :  { %v331_v59 = vpop.eup %330 }
  0x82   :  { %v333_v27 = vpop.eup %332  ;;  %v172_v62 = vxor.u32 2147483648, %v331_v59 }
  0x83   :  { %v169_v63 = vxor.u32 2147483648, %v333_v27 }
  0x84   :  { %v173_v0 = vsel %vm171_vm11, %v172_v62, %v333_v27  ;;  %v278_v1 = vsel %vm276_vm12, %v172_v62, %v333_v27 }
  0x85   :  { %v170_v3 = vsel %vm168_vm13, %v331_v59, %v169_v63  ;;  %v275_v4 = vsel %vm273_vm14, %v331_v59, %v169_v63 }
  0x86   :  { %v174_v5 = vsel %vm167_vm15, %v170_v3, %v173_v0  ;;  %v279_v6 = vsel %vm272_vm0, %v275_v4, %v278_v1 }
  0x87   :  { %v175_v7 = vsel %vm165_vm1, nan, %v174_v5  ;;  %v280_v8 = vsel %vm165_vm1, nan, %v279_v6 }
  0x88   :  { %v176_v9 = vmul.f32 %v175_v7, %v71_v2  ;;  %v281_v10 = vmul.f32 %v280_v8, %v71_v2 }
  0x8a   :  { %v284_v13 = vmul.f32 0.1, %v176_v9  ;;  %v285_v14 = vmul.f32 0.1, %v281_v10 }
  0x8c   :  { %v286_v15 = vadd.f32 %v284_v13, %v282_v11  ;;  %v287_v16 = vadd.f32 %v285_v14, %v283_v12 }
  0x8e   :  { %288 = vst [vmem:[#allocation7] sm:$0xff] %v286_v15  ;;  %289 = vst [vmem:[#allocation7 + $0x8] sm:$0xff] %v287_v16 }
  0x8f   :  { %367 = shalt.err (!%p364_p12)
}
  0x90   :  { %s368_s27 = scalar_lea.hbm %s458_s2, 256 }
  0x91   :  { %p369_p13 = scmp.ne.s32.totalorder %s458_s2, %s368_s27  ;;  %p372_p0 = scmp.lt.u32.totalorder %s368_s27, %s458_s2 }
  0x93   :  { %p374_p1 = pnand %p372_p0, %p369_p13 }
  0x95   :  { %377 = shalt.err (!%p374_p1)
}
  0x96   :  { %299 = dma.vmem_to_hbm [thread:$0]  %s297_s1, 256, %s458_s2, [#allocation6]  }
  0x97   :  { %380 = dma.done.wait [#allocation6], 256  }
  0x98   :  { %381 = vsyncadd [#allocation6], 4294967040 }
  0x99   :  { %303 = vsyncpa [#allocation5], 1 }
  0x9a   :  { %304 = vsyncpa [#allocation6], 1 }

</bundles_post_ra>
